<compile_context>
chip_gen: v7x
topology: tpu7x:2x2x1
jax: 0.10.0
libtpu: 0.0.40
codegen_flags: <defaults>
</compile_context>

<pallas_src>
import functools

import jax
import jax.numpy as jnp
from jax.experimental import pallas as pl
from jax.experimental.pallas import tpu as pltpu

_LANES = 128
_SUBLANES = 8
_DEF_BLOCK_BATCH = 2048  # max batch-tile rows per grid step


def _round_up(n: int, m: int) -> int:
    return (n + m - 1) // m * m


def _pad2d(x, rows: int, cols: int):
    return jnp.pad(x, ((0, rows - x.shape[0]), (0, cols - x.shape[1])))


# ----------------------------- kernels ------------------------------------


def _predict_effect(z, t, w1z_ref, w1t_ref, b1_ref, w2_ref, b2_ref, w3_ref, b3_ref):
    """intervention_predictor: Linear -> ReLU -> Linear -> ReLU -> Linear (f32 accum)."""
    cd = w1z_ref.dtype  # matmul operand dtype (f32 or bf16); accumulation is always f32
    h1 = (jnp.dot(z.astype(cd), w1z_ref[...], preferred_element_type=jnp.float32)
          + jnp.dot(t.astype(cd), w1t_ref[...], preferred_element_type=jnp.float32))
    h1 = jnp.maximum(h1 + b1_ref[...], 0.0)

    h2 = jnp.dot(h1.astype(cd), w2_ref[...], preferred_element_type=jnp.float32)
    h2 = jnp.maximum(h2 + b2_ref[...], 0.0)

    effect = jnp.dot(h2.astype(cd), w3_ref[...], preferred_element_type=jnp.float32)
    return effect + b3_ref[...]


def _intervention_kernel_auto(
    z_ref, t_ref,
    w1z_ref, w1t_ref, b1_ref,
    w2_ref, b2_ref,
    w3_ref, b3_ref,
    s1_ref, sb1_ref,
    s2_ref, sb2_ref,
    out_ref,
):
    """strength = sigmoid(strength_modulator(t)); out = z + strength * effect."""
    z = z_ref[...].astype(jnp.float32)
    t = t_ref[...].astype(jnp.float32)

    effect = _predict_effect(z, t, w1z_ref, w1t_ref, b1_ref,
                             w2_ref, b2_ref, w3_ref, b3_ref)

    cd = s1_ref.dtype
    hs = jnp.dot(t.astype(cd), s1_ref[...], preferred_element_type=jnp.float32)
    hs = jnp.maximum(hs + sb1_ref[...], 0.0)
    s_logit = jnp.dot(hs.astype(cd), s2_ref[...], preferred_element_type=jnp.float32)
    strength = jax.nn.sigmoid(s_logit + sb2_ref[...])

    out_ref[...] = (z + strength * effect).astype(out_ref.dtype)


def _intervention_kernel_given(
    z_ref, t_ref, strength_ref,
    w1z_ref, w1t_ref, b1_ref,
    w2_ref, b2_ref,
    w3_ref, b3_ref,
    out_ref,
):
    """Caller supplies intervention_strength; strength_modulator is skipped."""
    z = z_ref[...].astype(jnp.float32)
    t = t_ref[...].astype(jnp.float32)

    effect = _predict_effect(z, t, w1z_ref, w1t_ref, b1_ref,
                             w2_ref, b2_ref, w3_ref, b3_ref)

    strength = strength_ref[...].astype(jnp.float32)
    out_ref[...] = (z + strength * effect).astype(out_ref.dtype)


# ----------------------------- params -------------------------------------


def init_intervention_params(key, causal_dim: int, intervention_types: int = 3):
    """Deterministic, PyTorch-Linear-style uniform init. Weights stored (in, out)."""
    def linear(k, fan_in, fan_out):
        kw, kb = jax.random.split(k)
        bound = 1.0 / jnp.sqrt(jnp.float32(fan_in))
        w = jax.random.uniform(kw, (fan_in, fan_out), jnp.float32, -bound, bound)
        b = jax.random.uniform(kb, (1, fan_out), jnp.float32, -bound, bound)
        return w, b

    keys = jax.random.split(key, 5)
    in_dim = causal_dim + intervention_types
    w1, b1 = linear(keys[0], in_dim, 128)
    w2, b2 = linear(keys[1], 128, 64)
    w3, b3 = linear(keys[2], 64, causal_dim)
    s1, sb1 = linear(keys[3], intervention_types, 32)
    s2, sb2 = linear(keys[4], 32, causal_dim)
    return dict(
        w1z=w1[:causal_dim], w1t=w1[causal_dim:], b1=b1,
        w2=w2, b2=b2, w3=w3, b3=b3,
        s1=s1, sb1=sb1, s2=s2, sb2=sb2,
    )


def pad_intervention_params(params, matmul_dtype=jnp.float32):
    """One-time zero padding so every MXU contraction / intermediate is tile-aligned.

    - W1t / S1 rows (intervention_types) padded to a multiple of 8 sublanes.
    - W2 output / W3 input and S1 output / S2 input padded to 128 lanes.
    - Matmul weights cast to `matmul_dtype` (f32 or bf16); biases stay f32 (tail math).
    causal_dim-sized axes are left unpadded: z / strength / out keep their natural layout.
    """
    causal_dim = params["w3"].shape[1]
    types = params["w1t"].shape[0]
    kt = _round_up(types, _SUBLANES)
    h1 = params["w1z"].shape[1]                    # 128
    h2p = _round_up(params["w2"].shape[1], _LANES)  # 64 -> 128
    s1p = _round_up(params["s1"].shape[1], _LANES)  # 32 -> 128
    wd = matmul_dtype
    return dict(
        w1z=params["w1z"].astype(wd),
        w1t=_pad2d(params["w1t"], kt, h1).astype(wd),
        b1=params["b1"].astype(jnp.float32),
        w2=_pad2d(params["w2"], h1, h2p).astype(wd),
        b2=_pad2d(params["b2"], 1, h2p).astype(jnp.float32),
        w3=_pad2d(params["w3"], h2p, causal_dim).astype(wd),
        b3=params["b3"].astype(jnp.float32),
        s1=_pad2d(params["s1"], kt, s1p).astype(wd),
        sb1=_pad2d(params["sb1"], 1, s1p).astype(jnp.float32),
        s2=_pad2d(params["s2"], s1p, causal_dim).astype(wd),
        sb2=params["sb2"].astype(jnp.float32),
    )


# ----------------------------- wrapper -------------------------------------


def _pick_batch_tile(b: int, block_batch) -> int:
    if block_batch is not None:
        return _round_up(block_batch, _SUBLANES)
    b8 = _round_up(b, _SUBLANES)
    # >= 2 grid steps whenever possible so dimension_semantics=("parallel",) can shard
    # the batch across v7x's 2 TensorCores; cap the tile at _DEF_BLOCK_BATCH rows.
    n_steps = max(pl.cdiv(b8, _DEF_BLOCK_BATCH), 2 if b8 > _SUBLANES else 1)
    return _round_up(pl.cdiv(b8, n_steps), _SUBLANES)


@functools.partial(jax.jit, static_argnames=("with_strength", "block_batch"))
def _call_kernel(pparams, z, t, strength, with_strength: bool, block_batch):
    b, causal_dim = z.shape
    types = t.shape[1]
    kt = pparams["w1t"].shape[0]   # sublane-padded intervention_types
    h1 = pparams["w1z"].shape[1]
    h2p = pparams["w2"].shape[1]
    s1p = pparams["s1"].shape[1]

    # Only padding kept: intervention_type columns (3 -> 8). Tiny (B x 8 f32).
    t8 = _pad2d(t, b, kt) if kt != types else t

    tb = _pick_batch_tile(b, block_batch)
    grid = (pl.cdiv(b, tb),)  # edge block (if any) is masked by Pallas; rows are independent

    def batch_spec(feat):
        return pl.BlockSpec((tb, feat), lambda i: (i, 0))

    def resident(a):  # weights/biases: same block every step -> fetched once, VMEM-resident
        return pl.BlockSpec(a.shape, lambda i: (0, 0))

    weight_order = ("w1z", "w1t", "b1", "w2", "b2", "w3", "b3")
    if not with_strength:
        weight_order = weight_order + ("s1", "sb1", "s2", "sb2")
    weights = tuple(pparams[k] for k in weight_order)

    if with_strength:
        args = (z, t8, strength) + weights
        in_specs = [batch_spec(causal_dim), batch_spec(kt), batch_spec(causal_dim)]
        kernel = _intervention_kernel_given
    else:
        args = (z, t8) + weights
        in_specs = [batch_spec(causal_dim), batch_spec(kt)]
        kernel = _intervention_kernel_auto
    in_specs += [resident(w) for w in weights]

    # Advisory cost estimate so XLA can schedule around this small custom call.
    weight_bytes = sum(int(w.size) * w.dtype.itemsize for w in weights)
    flops_row = 2 * (causal_dim * h1 + kt * h1 + h1 * h2p + h2p * causal_dim)
    if not with_strength:
        flops_row += 2 * (kt * s1p + s1p * causal_dim)
    flops = b * (flops_row + 2 * causal_dim)
    transcendentals = 0 if with_strength else b * causal_dim
    io_cols = 2 * causal_dim + kt + (causal_dim if with_strength else 0)
    bytes_accessed = b * io_cols * 4 + weight_bytes

    return pl.pallas_call(
        kernel,
        out_shape=jax.ShapeDtypeStruct((b, causal_dim), z.dtype),
        grid=grid,
        in_specs=in_specs,
        out_specs=pl.BlockSpec((tb, causal_dim), lambda i: (i, 0)),
        compiler_params=pltpu.CompilerParams(
            dimension_semantics=("parallel",)),
        cost_estimate=pl.CostEstimate(
            flops=flops,
            transcendentals=transcendentals,
            bytes_accessed=bytes_accessed),
    )(*args)


def intervention_forward(padded_params, z_causal, intervention_type,
                         intervention_strength=None, block_batch=None):
    """Pallas equivalent of InterventionModule.forward.

    `padded_params` must come from pad_intervention_params(init_intervention_params(...)).
    """
    if intervention_strength is None:
        return _call_kernel(padded_params, z_causal, intervention_type, None,
                            with_strength=False, block_batch=block_batch)
    return _call_kernel(padded_params, z_causal, intervention_type,
                        intervention_strength, with_strength=True,
                        block_batch=block_batch)


# Pure-JAX reference (raw, unpadded params; HIGHEST precision to match f32 MXU math).
def intervention_forward_ref(params, z, t, strength=None):
    hp = jax.lax.Precision.HIGHEST
    h1 = jnp.maximum(jnp.dot(z, params["w1z"], precision=hp)
                     + jnp.dot(t, params["w1t"], precision=hp) + params["b1"], 0.0)
    h2 = jnp.maximum(jnp.dot(h1, params["w2"], precision=hp) + params["b2"], 0.0)
    effect = jnp.dot(h2, params["w3"], precision=hp) + params["b3"]
    if strength is None:
        s1 = jnp.maximum(jnp.dot(t, params["s1"], precision=hp) + params["sb1"], 0.0)
        strength = jax.nn.sigmoid(jnp.dot(s1, params["s2"], precision=hp) + params["sb2"])
    return z + strength * effect


# ------------------------------- main ---------------------------------------

if __name__ == "__main__":
    B = 8
    CAUSAL_DIM = 16
    INTERVENTION_TYPES = 3

    key = jax.random.PRNGKey(0)
    k_params, k_z, k_t, k_s, k_z2, k_t2, k_z3, k_t3 = jax.random.split(key, 8)

    raw_params = init_intervention_params(k_params, CAUSAL_DIM, INTERVENTION_TYPES)
    params = pad_intervention_params(raw_params)                        # f32 MXU operands
    params_bf16 = pad_intervention_params(raw_params, jnp.bfloat16)     # bf16 MXU operands

    z_causal = jax.random.normal(k_z, (B, CAUSAL_DIM), jnp.float32)
    idx = jax.random.randint(k_t, (B,), 0, INTERVENTION_TYPES)
    intervention_type = jax.nn.one_hot(idx, INTERVENTION_TYPES, dtype=jnp.float32)

    # Path 1: strength computed by strength_modulator (intervention_strength=None).
    out_auto = jax.block_until_ready(
        intervention_forward(params, z_causal, intervention_type))
    ref_auto = intervention_forward_ref(raw_params, z_causal, intervention_type)
    assert out_auto.shape == (B, CAUSAL_DIM)
    assert jnp.allclose(out_auto, ref_auto, atol=1e-4, rtol=1e-4), "auto-strength mismatch"

    # Path 2: user-provided intervention_strength.
    strength = jax.random.uniform(k_s, (B, CAUSAL_DIM), jnp.float32)
    out_given = jax.block_until_ready(
        intervention_forward(params, z_causal, intervention_type, strength))
    ref_given = intervention_forward_ref(raw_params, z_causal, intervention_type, strength)
    assert jnp.allclose(out_given, ref_given, atol=1e-4, rtol=1e-4), "given-strength mismatch"

    # Path 3: multi-tile batch grid (B=24, tile=8) exercising the pipelined/gridded path.
    B2 = 24
    z2 = jax.random.normal(k_z2, (B2, CAUSAL_DIM), jnp.float32)
    idx2 = jax.random.randint(k_t2, (B2,), 0, INTERVENTION_TYPES)
    t2 = jax.nn.one_hot(idx2, INTERVENTION_TYPES, dtype=jnp.float32)
    out_grid = jax.block_until_ready(
        intervention_forward(params, z2, t2, block_batch=8))
    ref_grid = intervention_forward_ref(raw_params, z2, t2)
    assert out_grid.shape == (B2, CAUSAL_DIM)
    assert jnp.allclose(out_grid, ref_grid, atol=1e-4, rtol=1e-4), "gridded mismatch"

    # Path 4: non-divisible batch (B=10) -> edge block masked by Pallas, no wrapper pad/slice.
    B3 = 10
    z3 = jax.random.normal(k_z3, (B3, CAUSAL_DIM), jnp.float32)
    idx3 = jax.random.randint(k_t3, (B3,), 0, INTERVENTION_TYPES)
    t3 = jax.nn.one_hot(idx3, INTERVENTION_TYPES, dtype=jnp.float32)
    out_edge = jax.block_until_ready(intervention_forward(params, z3, t3))
    ref_edge = intervention_forward_ref(raw_params, z3, t3)
    assert out_edge.shape == (B3, CAUSAL_DIM)
    assert jnp.allclose(out_edge, ref_edge, atol=1e-4, rtol=1e-4), "edge-block mismatch"

    # Path 5: bf16 MXU operands with f32 accumulation / tail (looser tolerance vs f32 ref).
    out_bf16 = jax.block_until_ready(
        intervention_forward(params_bf16, z_causal, intervention_type))
    assert jnp.allclose(out_bf16, ref_auto, atol=5e-2, rtol=5e-2), "bf16 mismatch"

    print("KERNEL_OK")
</pallas_src>

<mosaic_0001>
module attributes {stable_mosaic.version = 11 : i64} {
  func.func @_intervention_kernel_auto(%arg0: i32, %arg1: memref<8x16xf32, #tpu.memory_space<vmem>>, %arg2: memref<8x8xf32, #tpu.memory_space<vmem>>, %arg3: memref<16x128xf32, #tpu.memory_space<vmem>>, %arg4: memref<8x128xf32, #tpu.memory_space<vmem>>, %arg5: memref<1x128xf32, #tpu.memory_space<vmem>>, %arg6: memref<128x128xf32, #tpu.memory_space<vmem>>, %arg7: memref<1x128xf32, #tpu.memory_space<vmem>>, %arg8: memref<128x16xf32, #tpu.memory_space<vmem>>, %arg9: memref<1x16xf32, #tpu.memory_space<vmem>>, %arg10: memref<8x128xf32, #tpu.memory_space<vmem>>, %arg11: memref<1x128xf32, #tpu.memory_space<vmem>>, %arg12: memref<128x16xf32, #tpu.memory_space<vmem>>, %arg13: memref<1x16xf32, #tpu.memory_space<vmem>>, %arg14: memref<8x16xf32, #tpu.memory_space<vmem>>) attributes {dimension_semantics = [#tpu.dimension_semantics<parallel>], iteration_bounds = array<i64: 1>, scalar_prefetch = 0 : i64, scratch_operands = 0 : i64, tpu.core_type = #tpu.core_type<tc>, window_params = [{transform_indices = @transform_0, window_bounds = array<i64: 8, 16>}, {transform_indices = @transform_1, window_bounds = array<i64: 8, 8>}, {pipeline_mode = #tpu.pipeline_mode<synchronous>, transform_indices = @transform_2, window_bounds = array<i64: 16, 128>}, {pipeline_mode = #tpu.pipeline_mode<synchronous>, transform_indices = @transform_3, window_bounds = array<i64: 8, 128>}, {pipeline_mode = #tpu.pipeline_mode<synchronous>, transform_indices = @transform_4, window_bounds = array<i64: 1, 128>}, {pipeline_mode = #tpu.pipeline_mode<synchronous>, transform_indices = @transform_5, window_bounds = array<i64: 128, 128>}, {pipeline_mode = #tpu.pipeline_mode<synchronous>, transform_indices = @transform_6, window_bounds = array<i64: 1, 128>}, {pipeline_mode = #tpu.pipeline_mode<synchronous>, transform_indices = @transform_7, window_bounds = array<i64: 128, 16>}, {pipeline_mode = #tpu.pipeline_mode<synchronous>, transform_indices = @transform_8, window_bounds = array<i64: 1, 16>}, {pipeline_mode = #tpu.pipeline_mode<synchronous>, transform_indices = @transform_9, window_bounds = array<i64: 8, 128>}, {pipeline_mode = #tpu.pipeline_mode<synchronous>, transform_indices = @transform_10, window_bounds = array<i64: 1, 128>}, {pipeline_mode = #tpu.pipeline_mode<synchronous>, transform_indices = @transform_11, window_bounds = array<i64: 128, 16>}, {pipeline_mode = #tpu.pipeline_mode<synchronous>, transform_indices = @transform_12, window_bounds = array<i64: 1, 16>}, {transform_indices = @transform_13, window_bounds = array<i64: 8, 16>}]} {
    %c0 = arith.constant 0 : index
    %c0_0 = arith.constant 0 : index
    %0 = vector.load %arg1[%c0, %c0_0] : memref<8x16xf32, #tpu.memory_space<vmem>>, vector<8x16xf32>
    %c0_1 = arith.constant 0 : index
    %c0_2 = arith.constant 0 : index
    %1 = vector.load %arg2[%c0_1, %c0_2] : memref<8x8xf32, #tpu.memory_space<vmem>>, vector<8x8xf32>
    %c0_3 = arith.constant 0 : index
    %c0_4 = arith.constant 0 : index
    %2 = vector.load %arg3[%c0_3, %c0_4] : memref<16x128xf32, #tpu.memory_space<vmem>>, vector<16x128xf32>
    %cst = arith.constant dense<0.000000e+00> : vector<8x128xf32>
    %3 = tpu.matmul %0, %2, %cst {dimension_numbers = #tpu.dot_dimension_numbers<[1], [0], [0], [1], [0, 0, 1, 1], [], []>} : vector<8x16xf32>, vector<16x128xf32>, vector<8x128xf32> -> vector<8x128xf32>
    %c0_5 = arith.constant 0 : index
    %c0_6 = arith.constant 0 : index
    %4 = vector.load %arg4[%c0_5, %c0_6] : memref<8x128xf32, #tpu.memory_space<vmem>>, vector<8x128xf32>
    %cst_7 = arith.constant dense<0.000000e+00> : vector<8x128xf32>
    %5 = tpu.matmul %1, %4, %cst_7 {dimension_numbers = #tpu.dot_dimension_numbers<[1], [0], [0], [1], [0, 0, 1, 1], [], []>} : vector<8x8xf32>, vector<8x128xf32>, vector<8x128xf32> -> vector<8x128xf32>
    %6 = arith.addf %3, %5 : vector<8x128xf32>
    %c0_8 = arith.constant 0 : index
    %c0_9 = arith.constant 0 : index
    %7 = vector.load %arg5[%c0_8, %c0_9] : memref<1x128xf32, #tpu.memory_space<vmem>>, vector<1x128xf32>
    %8 = vector.broadcast %7 : vector<1x128xf32> to vector<8x128xf32>
    %9 = arith.addf %6, %8 : vector<8x128xf32>
    %cst_10 = arith.constant 0.000000e+00 : f32
    %10 = vector.broadcast %cst_10 : f32 to vector<8x128xf32>
    %11 = arith.maximumf %9, %10 : vector<8x128xf32>
    %c0_11 = arith.constant 0 : index
    %c0_12 = arith.constant 0 : index
    %12 = vector.load %arg6[%c0_11, %c0_12] : memref<128x128xf32, #tpu.memory_space<vmem>>, vector<128x128xf32>
    %cst_13 = arith.constant dense<0.000000e+00> : vector<8x128xf32>
    %13 = tpu.matmul %11, %12, %cst_13 {dimension_numbers = #tpu.dot_dimension_numbers<[1], [0], [0], [1], [0, 0, 1, 1], [], []>} : vector<8x128xf32>, vector<128x128xf32>, vector<8x128xf32> -> vector<8x128xf32>
    %c0_14 = arith.constant 0 : index
    %c0_15 = arith.constant 0 : index
    %14 = vector.load %arg7[%c0_14, %c0_15] : memref<1x128xf32, #tpu.memory_space<vmem>>, vector<1x128xf32>
    %15 = vector.broadcast %14 : vector<1x128xf32> to vector<8x128xf32>
    %16 = arith.addf %13, %15 : vector<8x128xf32>
    %cst_16 = arith.constant 0.000000e+00 : f32
    %17 = vector.broadcast %cst_16 : f32 to vector<8x128xf32>
    %18 = arith.maximumf %16, %17 : vector<8x128xf32>
    %c0_17 = arith.constant 0 : index
    %c0_18 = arith.constant 0 : index
    %19 = vector.load %arg8[%c0_17, %c0_18] : memref<128x16xf32, #tpu.memory_space<vmem>>, vector<128x16xf32>
    %cst_19 = arith.constant dense<0.000000e+00> : vector<8x16xf32>
    %20 = tpu.matmul %18, %19, %cst_19 {dimension_numbers = #tpu.dot_dimension_numbers<[1], [0], [0], [1], [0, 0, 1, 1], [], []>} : vector<8x128xf32>, vector<128x16xf32>, vector<8x16xf32> -> vector<8x16xf32>
    %c0_20 = arith.constant 0 : index
    %c0_21 = arith.constant 0 : index
    %21 = vector.load %arg9[%c0_20, %c0_21] : memref<1x16xf32, #tpu.memory_space<vmem>>, vector<1x16xf32>
    %22 = vector.broadcast %21 : vector<1x16xf32> to vector<8x16xf32>
    %23 = arith.addf %20, %22 : vector<8x16xf32>
    %c0_22 = arith.constant 0 : index
    %c0_23 = arith.constant 0 : index
    %24 = vector.load %arg10[%c0_22, %c0_23] : memref<8x128xf32, #tpu.memory_space<vmem>>, vector<8x128xf32>
    %cst_24 = arith.constant dense<0.000000e+00> : vector<8x128xf32>
    %25 = tpu.matmul %1, %24, %cst_24 {dimension_numbers = #tpu.dot_dimension_numbers<[1], [0], [0], [1], [0, 0, 1, 1], [], []>} : vector<8x8xf32>, vector<8x128xf32>, vector<8x128xf32> -> vector<8x128xf32>
    %c0_25 = arith.constant 0 : index
    %c0_26 = arith.constant 0 : index
    %26 = vector.load %arg11[%c0_25, %c0_26] : memref<1x128xf32, #tpu.memory_space<vmem>>, vector<1x128xf32>
    %27 = vector.broadcast %26 : vector<1x128xf32> to vector<8x128xf32>
    %28 = arith.addf %25, %27 : vector<8x128xf32>
    %cst_27 = arith.constant 0.000000e+00 : f32
    %29 = vector.broadcast %cst_27 : f32 to vector<8x128xf32>
    %30 = arith.maximumf %28, %29 : vector<8x128xf32>
    %c0_28 = arith.constant 0 : index
    %c0_29 = arith.constant 0 : index
    %31 = vector.load %arg12[%c0_28, %c0_29] : memref<128x16xf32, #tpu.memory_space<vmem>>, vector<128x16xf32>
    %cst_30 = arith.constant dense<0.000000e+00> : vector<8x16xf32>
    %32 = tpu.matmul %30, %31, %cst_30 {dimension_numbers = #tpu.dot_dimension_numbers<[1], [0], [0], [1], [0, 0, 1, 1], [], []>} : vector<8x128xf32>, vector<128x16xf32>, vector<8x16xf32> -> vector<8x16xf32>
    %c0_31 = arith.constant 0 : index
    %c0_32 = arith.constant 0 : index
    %33 = vector.load %arg13[%c0_31, %c0_32] : memref<1x16xf32, #tpu.memory_space<vmem>>, vector<1x16xf32>
    %34 = vector.broadcast %33 : vector<1x16xf32> to vector<8x16xf32>
    %35 = arith.addf %32, %34 : vector<8x16xf32>
    %36 = arith.negf %35 : vector<8x16xf32>
    %37 = math.exp %36 : vector<8x16xf32>
    %cst_33 = arith.constant 1.000000e+00 : f32
    %38 = vector.broadcast %cst_33 : f32 to vector<8x16xf32>
    %39 = arith.addf %38, %37 : vector<8x16xf32>
    %40 = arith.divf %38, %39 : vector<8x16xf32>
    %41 = arith.mulf %40, %23 : vector<8x16xf32>
    %42 = arith.addf %0, %41 : vector<8x16xf32>
    %c0_34 = arith.constant 0 : index
    %c0_35 = arith.constant 0 : index
    %43 = vector.load %arg14[%c0_34, %c0_35] : memref<8x16xf32, #tpu.memory_space<vmem>>, vector<8x16xf32>
    tpu.vector_store %arg14[%c0_34, %c0_35], %42 {strides = array<i32>} : memref<8x16xf32, #tpu.memory_space<vmem>>, vector<8x16xf32>,
    return
  }
  func.func @transform_0(%arg0: i32) -> (i32, i32) {
    %c0_i32 = arith.constant 0 : i32
    %c0_i32_0 = arith.constant 0 : i32
    return %arg0, %c0_i32 : i32, i32
  }
  func.func @transform_1(%arg0: i32) -> (i32, i32) {
    %c0_i32 = arith.constant 0 : i32
    %c0_i32_0 = arith.constant 0 : i32
    return %arg0, %c0_i32 : i32, i32
  }
  func.func @transform_2(%arg0: i32) -> (i32, i32) {
    %c0_i32 = arith.constant 0 : i32
    %c0_i32_0 = arith.constant 0 : i32
    %c0_i32_1 = arith.constant 0 : i32
    return %c0_i32, %c0_i32_0 : i32, i32
  }
  func.func @transform_3(%arg0: i32) -> (i32, i32) {
    %c0_i32 = arith.constant 0 : i32
    %c0_i32_0 = arith.constant 0 : i32
    %c0_i32_1 = arith.constant 0 : i32
    return %c0_i32, %c0_i32_0 : i32, i32
  }
  func.func @transform_4(%arg0: i32) -> (i32, i32) {
    %c0_i32 = arith.constant 0 : i32
    %c0_i32_0 = arith.constant 0 : i32
    %c0_i32_1 = arith.constant 0 : i32
    return %c0_i32, %c0_i32_0 : i32, i32
  }
  func.func @transform_5(%arg0: i32) -> (i32, i32) {
    %c0_i32 = arith.constant 0 : i32
    %c0_i32_0 = arith.constant 0 : i32
    %c0_i32_1 = arith.constant 0 : i32
    return %c0_i32, %c0_i32_0 : i32, i32
  }
  func.func @transform_6(%arg0: i32) -> (i32, i32) {
    %c0_i32 = arith.constant 0 : i32
    %c0_i32_0 = arith.constant 0 : i32
    %c0_i32_1 = arith.constant 0 : i32
    return %c0_i32, %c0_i32_0 : i32, i32
  }
  func.func @transform_7(%arg0: i32) -> (i32, i32) {
    %c0_i32 = arith.constant 0 : i32
    %c0_i32_0 = arith.constant 0 : i32
    %c0_i32_1 = arith.constant 0 : i32
    return %c0_i32, %c0_i32_0 : i32, i32
  }
  func.func @transform_8(%arg0: i32) -> (i32, i32) {
    %c0_i32 = arith.constant 0 : i32
    %c0_i32_0 = arith.constant 0 : i32
    %c0_i32_1 = arith.constant 0 : i32
    return %c0_i32, %c0_i32_0 : i32, i32
  }
  func.func @transform_9(%arg0: i32) -> (i32, i32) {
    %c0_i32 = arith.constant 0 : i32
    %c0_i32_0 = arith.constant 0 : i32
    %c0_i32_1 = arith.constant 0 : i32
    return %c0_i32, %c0_i32_0 : i32, i32
  }
  func.func @transform_10(%arg0: i32) -> (i32, i32) {
    %c0_i32 = arith.constant 0 : i32
    %c0_i32_0 = arith.constant 0 : i32
    %c0_i32_1 = arith.constant 0 : i32
    return %c0_i32, %c0_i32_0 : i32, i32
  }
  func.func @transform_11(%arg0: i32) -> (i32, i32) {
    %c0_i32 = arith.constant 0 : i32
    %c0_i32_0 = arith.constant 0 : i32
    %c0_i32_1 = arith.constant 0 : i32
    return %c0_i32, %c0_i32_0 : i32, i32
  }
  func.func @transform_12(%arg0: i32) -> (i32, i32) {
    %c0_i32 = arith.constant 0 : i32
    %c0_i32_0 = arith.constant 0 : i32
    %c0_i32_1 = arith.constant 0 : i32
    return %c0_i32, %c0_i32_0 : i32, i32
  }
  func.func @transform_13(%arg0: i32) -> (i32, i32) {
    %c0_i32 = arith.constant 0 : i32
    %c0_i32_0 = arith.constant 0 : i32
    return %arg0, %c0_i32 : i32, i32
  }
}

</mosaic_0001>

<bundles_post_ra>
// kernel: _call_kernel.1
= control target key start
LH: loop header
LB: loop body
LE: loop exit
PB: predicated region body
PF: predicated region fallthrough
CT: control target
= control target key end

     0   :  { %vm50_vm0 = vcmask 64512   ;;  %v885_v2 = vmov 0.0   ;;  %vm886_vm1 = vmmov 0   ;;  %v887_v8 = vmov 0.0|0.0   ;;  %s1199_s0 = inlined_call_operand.vmem [shape: f32[8,16], index: 0, kind: input, shape index: {}]   ;;  %s1200_s1 = inlined_call_operand.vmem [shape: f32[8,8], index: 1, kind: input, shape index: {}]   ;;  %s1201_s2 = inlined_call_operand.vmem [shape: f32[16,128], index: 2, kind: input, shape index: {}]   ;;  %s1202_s3 = inlined_call_operand.vmem [shape: f32[8,128], index: 3, kind: input, shape index: {}]   ;;  %s1203_s4 = inlined_call_operand.vmem [shape: f32[1,128], index: 4, kind: input, shape index: {}]   ;;  %s1204_s5 = inlined_call_operand.vmem [shape: f32[128,128], index: 5, kind: input, shape index: {}]   ;;  %s1205_s6 = inlined_call_operand.vmem [shape: f32[1,128], index: 6, kind: input, shape index: {}]   ;;  %s1206_s7 = inlined_call_operand.vmem [shape: f32[128,16], index: 7, kind: input, shape index: {}]   ;;  %s1207_s8 = inlined_call_operand.vmem [shape: f32[1,16], index: 8, kind: input, shape index: {}]   ;;  %s1208_s9 = inlined_call_operand.vmem [shape: f32[8,128], index: 9, kind: input, shape index: {}]   ;;  %s1209_s10 = inlined_call_operand.vmem [shape: f32[1,128], index: 10, kind: input, shape index: {}]   ;;  %s1210_s11 = inlined_call_operand.vmem [shape: f32[128,16], index: 11, kind: input, shape index: {}]   ;;  %s1211_s12 = inlined_call_operand.vmem [shape: f32[1,16], index: 12, kind: input, shape index: {}]   ;;  %s1212_s13 = inlined_call_operand.hbm [shape: f32[8,16], index: 13, kind: output, shape index: {}]  }
   0x1   :  { %v49_v0 = vld [vmem:[%s1202_s3] sm:$0xff]  ;;  %656 = vmatprep.subr.mxu0 %v885_v2  ;;  %658 = vmatprep.mubr.msk.f32.mxu0 %vm886_vm1, %v885_v2  ;;  %v48_v4 = vld [vmem:[%s1201_s2 + $0x8] sm:$0xff]  ;;  %vm124_vm2 = vcmask 130048   ;;  %v209_v11 = vld [vmem:[%s1204_s5 + $0x10] sm:$0xff] }
   0x2   :  { %v965_v1 = vld [vmem:[%s1200_s1] sm:$0xff]  ;;  %657 = vmatpush3.msra.mxu0 %v49_v0  ;;  %v208_v7 = vld [vmem:[%s1204_s5 + $0x8] sm:$0xff]  ;;  %805 = vmatprep.subr.bf16.mxu1 %v887_v8  ;;  %v210_v12 = vld [vmem:[%s1204_s5 + $0x18] sm:$0xff] }
   0x3   :  { %v47_v3 = vld [vmem:[%s1201_s2] sm:$0xff]  ;;  %659 = vmatmul.mubr.msk.f32.vlgmr.msra.gmra.mrb[0].mxu0 %vm50_vm0, %v965_v1  ;;  %778 = vmatprep.subr.bf16.mxu0 %v887_v8 }
   0x4   :  { %v779_v5 = vpack.c.bf16 %v48_v4, %v47_v3  ;;  %v207_v6 = vld [vmem:[%s1204_s5] sm:$0xff]  ;;  %665 = vmatprep.mubr.msk.f32.mxu0 %vm886_vm1, %v885_v2  ;;  %735 = vmatprep.mubr.msk.f32.mxu1 %vm886_vm1, %v885_v2 }
   0x5   :  { %v991_v9 = vld [vmem:[%s1199_s0] sm:$0xff]  ;;  %v782_v10 = vpack.c.bf16 %v208_v7, %v207_v6 }
   0x6   :  { %780 = vmatpush3.bf16.msra.mxu0 %v779_v5 }
   0x7   :  { %781 = vmatprep.subr.bf16.mxu0 %v887_v8 }
   0x8   :  { %18 = vsyncpa [#allocation3], 0  ;;  %v785_v13 = vpack.c.bf16 %v210_v12, %v209_v11  ;;  %v211_v14 = vld [vmem:[%s1204_s5 + $0x20] sm:$0xff]  ;;  %v212_v15 = vld [vmem:[%s1204_s5 + $0x28] sm:$0xff]  ;;  %s888_s25 = smov [#allocation2]  }
   0x9   :  { %666 = vmatmul.mubr.msk.f32.vlgmr.msra.gmra.mrb[2].mxu0 %vm124_vm2, %v991_v9  ;;  %v788_v16 = vpack.c.bf16 %v212_v15, %v211_v14  ;;  %v213_v17 = vld [vmem:[%s1204_s5 + $0x30] sm:$0xff]  ;;  %v214_v18 = vld [vmem:[%s1204_s5 + $0x38] sm:$0xff]  ;;  %v215_v20 = vld [vmem:[%s1204_s5 + $0x40] sm:$0xff]  ;;  %s581_s26 = sshll.u32 %s888_s25, 4  ;;  %s582_s26 = int_to_ptr.vmem [resolvable:$true] %s581_s26 }
   0xa   :  { %783 = vmatpush3.bf16.msra.mxu0 %v782_v10  ;;  %700 = vmatprep.mubr.msk.f32.mxu0 %vm886_vm1, %v885_v2  ;;  %v791_v19 = vpack.c.bf16 %v214_v18, %v213_v17  ;;  %v216_v21 = vld [vmem:[%s1204_s5 + $0x48] sm:$0xff]  ;;  %v217_v23 = vld [vmem:[%s1204_s5 + $0x50] sm:$0xff]  ;;  %v218_v24 = vld [vmem:[%s1204_s5 + $0x58] sm:$0xff]  ;;  %p866_p1 = scmp.lt.s32.totalorder %s582_s26, %s582_s26 }
   0xb   :  { %784 = vmatprep.subr.bf16.mxu0 %v887_v8  ;;  %v794_v22 = vpack.c.bf16 %v216_v21, %v215_v20  ;;  %v797_v25 = vpack.c.bf16 %v218_v24, %v217_v23  ;;  %v219_v26 = vld [vmem:[%s1204_s5 + $0x60] sm:$0xff]  ;;  %v220_v27 = vld [vmem:[%s1204_s5 + $0x68] sm:$0xff]  ;;  %v221_v29 = vld [vmem:[%s1204_s5 + $0x70] sm:$0xff] }
   0xc   :  { %v800_v28 = vpack.c.bf16 %v220_v27, %v219_v26  ;;  %v222_v30 = vld [vmem:[%s1204_s5 + $0x78] sm:$0xff]  ;;  %v301_v32 = vld [vmem:[%s1206_s7] sm:$0xff]  ;;  %v302_v33 = vld [vmem:[%s1206_s7 + $0x8] sm:$0xff] }
   0xd   :  { %v803_v31 = vpack.c.bf16 %v222_v30, %v221_v29  ;;  %v303_v34 = vld [vmem:[%s1206_s7 + $0x10] sm:$0xff]  ;;  %v806_v35 = vpack.c.bf16 %v302_v33, %v301_v32  ;;  %v304_v36 = vld [vmem:[%s1206_s7 + $0x18] sm:$0xff]  ;;  %v305_v38 = vld [vmem:[%s1206_s7 + $0x20] sm:$0xff] }
   0xe   :  { %786 = vmatpush3.bf16.msra.mxu0 %v785_v13  ;;  %v809_v37 = vpack.c.bf16 %v304_v36, %v303_v34  ;;  %v306_v39 = vld [vmem:[%s1206_s7 + $0x28] sm:$0xff]  ;;  %v307_v41 = vld [vmem:[%s1206_s7 + $0x30] sm:$0xff]  ;;  %v308_v42 = vld [vmem:[%s1206_s7 + $0x38] sm:$0xff] }
   0xf   :  { %787 = vmatprep.subr.bf16.mxu0 %v887_v8  ;;  %807 = vmatpush3.bf16.msra.mxu1 %v806_v35  ;;  %v812_v40 = vpack.c.bf16 %v306_v39, %v305_v38  ;;  %v815_v43 = vpack.c.bf16 %v308_v42, %v307_v41  ;;  %v309_v44 = vld [vmem:[%s1206_s7 + $0x40] sm:$0xff]  ;;  %v310_v45 = vld [vmem:[%s1206_s7 + $0x48] sm:$0xff]  ;;  %v311_v47 = vld [vmem:[%s1206_s7 + $0x50] sm:$0xff] }
  0x10   :  { %808 = vmatprep.subr.bf16.mxu1 %v887_v8  ;;  %v818_v46 = vpack.c.bf16 %v310_v45, %v309_v44  ;;  %v312_v48 = vld [vmem:[%s1206_s7 + $0x58] sm:$0xff]  ;;  %v313_v50 = vld [vmem:[%s1206_s7 + $0x60] sm:$0xff]  ;;  %v314_v51 = vld [vmem:[%s1206_s7 + $0x68] sm:$0xff] }
  0x11   :  { %v821_v49 = vpack.c.bf16 %v312_v48, %v311_v47  ;;  %v824_v52 = vpack.c.bf16 %v314_v51, %v313_v50  ;;  %v591_v56 = vld [vmem:[%s1203_s4] ss:$0 sm:$0xff]  ;;  %v315_v62 = vld [vmem:[%s1206_s7 + $0x70] sm:$0xff]  ;;  %v316_v63 = vld [vmem:[%s1206_s7 + $0x78] sm:$0xff] }
  0x12   :  { %789 = vmatpush3.bf16.msra.mxu0 %v788_v16  ;;  %v394_v61 = vld [vmem:[%s1208_s9] sm:$0xff]  ;;  %v827_v0 = vpack.c.bf16 %v316_v63, %v315_v62  ;;  %v474_v4 = vld [vmem:[%s1210_s11 + $0x8] sm:$0xff]  ;;  %v475_v12 = vld [vmem:[%s1210_s11 + $0x10] sm:$0xff] }
  0x13   :  { %790 = vmatprep.subr.bf16.mxu0 %v887_v8  ;;  %810 = vmatpush3.bf16.msra.mxu1 %v809_v37  ;;  %v592_v3 = vld [vmem:[%s1205_s6] ss:$0 sm:$0xff]  ;;  %v476_v13 = vld [vmem:[%s1210_s11 + $0x18] sm:$0xff]  ;;  %v478_v18 = vld [vmem:[%s1210_s11 + $0x28] sm:$0xff] }
  0x14   :  { %811 = vmatprep.subr.bf16.mxu1 %v887_v8  ;;  %v833_v16 = vpack.c.bf16 %v476_v13, %v475_v12  ;;  %v477_v17 = vld [vmem:[%s1210_s11 + $0x20] sm:$0xff]  ;;  %v479_v20 = vld [vmem:[%s1210_s11 + $0x30] sm:$0xff]  ;;  %v482_v23 = vld [vmem:[%s1210_s11 + $0x48] sm:$0xff] }
  0x15   :  { %v484_v26 = vld [vmem:[%s1210_s11 + $0x58] sm:$0xff]  ;;  %v486_v29 = vld [vmem:[%s1210_s11 + $0x68] sm:$0xff]  ;;  %v487_v32 = vld [vmem:[%s1210_s11 + $0x70] sm:$0xff] }
  0x16   :  { %792 = vmatpush3.bf16.msra.mxu0 %v791_v19  ;;  %v836_v19 = vpack.c.bf16 %v478_v18, %v477_v17  ;;  %v488_v33 = vld [vmem:[%s1210_s11 + $0x78] sm:$0xff]  ;;  %v596_v39 = vld [vmem:[%s1211_s12] ss:$0 sm:$0xff]  ;;  %s861_s12 = scalar_lea.vmem %s582_s26, 128 }
  0x17   :  { %793 = vmatprep.subr.bf16.mxu0 %v887_v8  ;;  %813 = vmatpush3.bf16.msra.mxu1 %v812_v40  ;;  %v851_v35 = vpack.c.bf16 %v488_v33, %v487_v32  ;;  %p862_p0 = scmp.ne.s32.totalorder %s582_s26, %s861_s12  ;;  %p867_p2 = scmp.lt.s32.totalorder %s861_s12, %s861_s12 }
  0x18   :  { %814 = vmatprep.subr.bf16.mxu1 %v887_v8 }
  0x19   :  { %p868_p3 = por %p867_p2, %p866_p1 }
  0x1a   :  { %795 = vmatpush3.bf16.msra.mxu0 %v794_v22  ;;  %v481_v22 = vld [vmem:[%s1210_s11 + $0x40] sm:$0xff] }
  0x1b   :  { %796 = vmatprep.subr.bf16.mxu0 %v887_v8  ;;  %816 = vmatpush3.bf16.msra.mxu1 %v815_v43  ;;  %v842_v24 = vpack.c.bf16 %v482_v23, %v481_v22  ;;  %p869_p4 = pnand %p868_p3, %p862_p0 }
  0x1c   :  { %817 = vmatprep.subr.bf16.mxu1 %v887_v8 }
  0x1e   :  { %798 = vmatpush3.bf16.msra.mxu0 %v797_v25  ;;  %v483_v25 = vld [vmem:[%s1210_s11 + $0x50] sm:$0xff] }
  0x1f   :  { %799 = vmatprep.subr.bf16.mxu0 %v887_v8  ;;  %819 = vmatpush3.bf16.msra.mxu1 %v818_v46  ;;  %v845_v27 = vpack.c.bf16 %v484_v26, %v483_v25 }
  0x20   :  { %820 = vmatprep.subr.bf16.mxu1 %v887_v8 }
  0x22   :  { %801 = vmatpush3.bf16.msra.mxu0 %v800_v28  ;;  %v485_v28 = vld [vmem:[%s1210_s11 + $0x60] sm:$0xff] }
  0x23   :  { %802 = vmatprep.subr.bf16.mxu0 %v887_v8  ;;  %822 = vmatpush3.bf16.msra.mxu1 %v821_v49  ;;  %v848_v30 = vpack.c.bf16 %v486_v29, %v485_v28 }
  0x24   :  { %823 = vmatprep.subr.bf16.mxu1 %v887_v8 }
  0x26   :  { %804 = vmatpush3.bf16.msra.mxu0 %v803_v31  ;;  %v594_v31 = vld [vmem:[%s1209_s10] ss:$0 sm:$0xff] }
  0x27   :  { %738 = vmatprep.subr.mxu0 %v885_v2  ;;  %825 = vmatpush3.bf16.msra.mxu1 %v824_v52 }
  0x28   :  { %826 = vmatprep.subr.bf16.mxu1 %v887_v8 }
  0x2b   :  { %828 = vmatpush3.bf16.msra.mxu1 %v827_v0 }
  0x2c   :  { %829 = vmatprep.subr.bf16.mxu1 %v887_v8 }
  0xd6   :  { %v120_v53 = vpop.f32.mrb[0].mxu0 }
  0xd7   :  { %v660_v54 = vpop.f32.mrb[1].mxu0 }
  0xdc   :  { %v194_v55 = vpop.f32.mrb[2].mxu0 }
  0xdd   :  { %v195_v57 = vadd.f32 %v194_v55, %v120_v53  ;;  %v667_v58 = vpop.f32.mrb[3].mxu0 }
  0xdf   :  { %v205_v59 = vadd.f32 %v591_v56, %v195_v57 }
  0xe1   :  { %v206_v60 = vmax.f32 %v205_v59, 0.0 }
  0xe3   :  { %701 = vmatmul.mubr.f32.vlgmr.msra.gmra.mrb[4].mxu0 %v206_v60 }
  0xe4   :  { %739 = vmatpush3.msra.mxu0 %v394_v61  ;;  %740 = vmatprep.mubr.msk.f32.mxu0 %vm886_vm1, %v885_v2 }
  0xe7   :  { %741 = vmatmul.mubr.msk.f32.vlgmr.msra.gmra.mrb[6].mxu0 %vm50_vm0, %v965_v1  ;;  %v473_v1 = vld [vmem:[%s1210_s11] sm:$0xff] }
  0xe8   :  { %v830_v10 = vpack.c.bf16 %v474_v4, %v473_v1 }
 0x1b6   :  { %v296_v5 = vpop.f32.mrb[4].mxu0 }
 0x1b7   :  { %v297_v6 = vadd.f32 %v592_v3, %v296_v5  ;;  %v702_v7 = vpop.f32.mrb[5].mxu0 }
 0x1b9   :  { %v300_v11 = vmax.f32 %v297_v6, 0.0 }
 0x1ba   :  { %v468_v14 = vpop.f32.mrb[6].mxu0 }
 0x1bb   :  { %736 = vmatmul.mubr.f32.vlgmr.msra.gmra.mrb[0].mxu1 %v300_v11  ;;  %v742_v15 = vpop.f32.mrb[7].mxu0  ;;  %v469_v34 = vadd.f32 %v594_v31, %v468_v14 }
 0x1bc   :  { %831 = vmatpush3.bf16.msra.mxu1 %v830_v10  ;;  %775 = vmatprep.mubr.msk.f32.mxu1 %vm886_vm1, %v885_v2  ;;  %v480_v2 = vld [vmem:[%s1210_s11 + $0x38] sm:$0xff] }
 0x1bd   :  { %832 = vmatprep.subr.bf16.mxu1 %v887_v8  ;;  %v839_v21 = vpack.c.bf16 %v480_v2, %v479_v20  ;;  %v472_v36 = vmax.f32 %v469_v34, 0.0 }
 0x1c0   :  { %834 = vmatpush3.bf16.msra.mxu1 %v833_v16 }
 0x1c1   :  { %835 = vmatprep.subr.bf16.mxu1 %v887_v8 }
 0x1c4   :  { %837 = vmatpush3.bf16.msra.mxu1 %v836_v19 }
 0x1c5   :  { %838 = vmatprep.subr.bf16.mxu1 %v887_v8 }
 0x1c8   :  { %840 = vmatpush3.bf16.msra.mxu1 %v839_v21 }
 0x1c9   :  { %841 = vmatprep.subr.bf16.mxu1 %v887_v8 }
 0x1cc   :  { %843 = vmatpush3.bf16.msra.mxu1 %v842_v24 }
 0x1cd   :  { %844 = vmatprep.subr.bf16.mxu1 %v887_v8 }
 0x1d0   :  { %846 = vmatpush3.bf16.msra.mxu1 %v845_v27 }
 0x1d1   :  { %847 = vmatprep.subr.bf16.mxu1 %v887_v8 }
 0x1d4   :  { %849 = vmatpush3.bf16.msra.mxu1 %v848_v30 }
 0x1d5   :  { %850 = vmatprep.subr.bf16.mxu1 %v887_v8  ;;  %v593_v8 = vld [vmem:[%s1207_s8] ss:$0 sm:$0xff] }
 0x1d8   :  { %852 = vmatpush3.bf16.msra.mxu1 %v851_v35 }
 0x1db   :  { %776 = vmatmul.mubr.f32.vlgmr.msra.gmra.mrb[2].mxu1 %v472_v36 }
 0x28e   :  { %v390_v37 = vpop.f32.mrb[0].mxu1 }
 0x28f   :  { %v737_v38 = vpop.f32.mrb[1].mxu1  ;;  %v391_v46 = vadd.f32 %v593_v8, %v390_v37 }
 0x2ae   :  { %v562_v40 = vpop.f32.mrb[2].mxu1 }
 0x2af   :  { %v563_v41 = vadd.f32 %v596_v39, %v562_v40  ;;  %v777_v42 = vpop.f32.mrb[3].mxu1 }
 0x2b1   :  { %v597_v43 = vmul.f32 -1.442695, %v563_v41 }
 0x2b3   :  { %857 = vpow2.f32 %v597_v43 }
 0x2bd   :  { %v858_v44 = vpop.eup %857 }
 0x2be   :  { %v569_v45 = vadd.f32 1.0, %v858_v44 }
 0x2c0   :  { %859 = vrcp.f32 %v569_v45 }
 0x2ca   :  { %v860_v47 = vpop.eup %859 }
 0x2cb   :  { %v572_v48 = vmul.f32 %v860_v47, %v391_v46 }
 0x2cd   :  { %v573_v49 = vadd.f32 %v572_v48, %v991_v9 }
 0x2cf   :  { %574 = vst.msk [vmem:[#allocation2] sm:$0xff] %vm124_vm2, %v573_v49 }
 0x2d0   :  { %872 = shalt.err (!%p869_p4)
}
 0x2d1   :  { %s873_s8 = scalar_lea.hbm %s1212_s13, 128 }
 0x2d2   :  { %p874_p5 = scmp.ne.s32.totalorder %s1212_s13, %s873_s8  ;;  %p877_p6 = scmp.lt.u32.totalorder %s873_s8, %s1212_s13 }
 0x2d4   :  { %p879_p7 = pnand %p877_p6, %p874_p5 }
 0x2d6   :  { %882 = shalt.err (!%p879_p7)
}
 0x2d7   :  { %584 = dma.vmem_to_hbm [thread:$0]  %s582_s26, 128, %s1212_s13, [#allocation3]  }
 0x2d8   :  { %883 = dma.done.wait [#allocation3], 128  }
 0x2d9   :  { %884 = vsyncadd [#allocation3], 4294967168 }
 0x2da   :  { %588 = vsyncpa [#allocation3], 1 }

</bundles_post_ra>
